<compile_context>
chip_gen: v5e
topology: v5e:2x2
jax: 0.10.0
libtpu: 0.0.40
codegen_flags: <defaults>
</compile_context>

<pallas_src>
import math

import jax
import jax.numpy as jnp
from jax.experimental import pallas as pl
from jax.experimental.pallas import tpu as pltpu


# ---------------------------------------------------------------------------
# Kernels
# ---------------------------------------------------------------------------
def _pair_rows_dense_kernel(base_ref, rows_ref, out_ref):
    """Lane-dense fast path.

    base_ref: (1, 1, CW)   hidden_1 chunk interleaved with zeros (row-invariant).
    rows_ref: (1, TI, W)   hidden_2 pattern [0_F, x_i], lane period W (mult of 128).
    out_ref:  (1, TI, CW)  lane-dense output chunk, CW a multiple of W.

    Each unrolled step: sublane-broadcast of a (1, W) base chunk + one VPU add
    + one dense 128-aligned store. No concatenate, no masking, no relayout.
    """
    w = rows_ref.shape[-1]
    cw = out_ref.shape[-1]
    for c in range(cw // w):               # static unroll, cw // w <= 16
        lo = c * w
        out_ref[0, :, lo:lo + w] = base_ref[0, :, lo:lo + w] + rows_ref[0]


def _pair_gen_general_kernel(seq_ref, rows_ref, out_ref):
    """General fallback (any L, F): two direct half-stores, no concatenate.

    seq_ref:  (1, L, F)          full sequence of batch b (row-invariant).
    rows_ref: (1, TI, F)         rows i of this tile (pipeline-prefetched).
    out_ref:  (1, TI, L, 2F)
    """
    seq = seq_ref[0]                        # (L, F)
    rows = rows_ref[0]                      # (TI, F)
    ti = rows.shape[0]
    l, f = seq.shape
    out_ref[0, :, :, :f] = jnp.broadcast_to(seq[None, :, :], (ti, l, f))
    out_ref[0, :, :, f:] = jnp.broadcast_to(rows[:, None, :], (ti, l, f))


# ---------------------------------------------------------------------------
# Tiling heuristics
# ---------------------------------------------------------------------------
def _pick_chunk_cols(n_chunks: int, w_bytes: int, budget: int, k_max: int = 16) -> int:
    """Columns-per-step factor k (CW = k*W): largest divisor of n_chunks with
    k <= k_max that still leaves room for >= 8 output rows in the budget."""
    k = 1
    for cand in range(1, min(k_max, n_chunks) + 1):
        if n_chunks % cand == 0 and cand * w_bytes * 8 <= budget:
            k = cand
    return k


def _pick_row_tile(L: int, row_bytes: int, budget: int) -> int:
    """Rows per output block: as many as fit the budget; a multiple of 8
    (sublane tile) or equal to L. Non-divisors of L are allowed (Pallas masks
    the ragged last tile)."""
    cap = max(1, budget // max(row_bytes, 1))
    if L <= cap:
        return L
    t = (cap // 8) * 8
    while t >= 8:                           # prefer exact divisors of L
        if L % t == 0:
            return t
        t -= 8
    if cap >= 8:
        return (cap // 8) * 8               # ragged last row tile
    return min(L, 8)


# ---------------------------------------------------------------------------
# Wrapper
# ---------------------------------------------------------------------------
def pair_generation0(text, *, block_budget_bytes: int = 4 << 20):
    """text: (B, L, F) -> (B, L, L, 2F), same contents as the PyTorch module."""
    B, L, F = text.shape
    two_f = 2 * F
    l2f = L * two_f
    itemsize = jnp.dtype(text.dtype).itemsize

    # Lane period of the per-row (hidden_2) pattern: smallest multiple of 2F
    # that is 128-aligned.
    w = (two_f * 128) // math.gcd(two_f, 128)            # lcm(2F, 128)
    use_dense = (l2f % w) == 0

    out_bytes = B * L * l2f * itemsize
    cost = pl.CostEstimate(
        flops=0,
        transcendentals=0,
        bytes_accessed=out_bytes + 3 * B * L * F * itemsize,
    )

    if use_dense:
        n_chunks = l2f // w
        k = _pick_chunk_cols(n_chunks, w * itemsize, block_budget_bytes)
        cw = k * w                                       # lane width per step
        col_tiles = n_chunks // k
        ti = _pick_row_tile(L, cw * itemsize, block_budget_bytes)
        grid = (B, pl.cdiv(L, ti), col_tiles)

        # hidden_1 interleaved with zeros: base[b,0,j*2F+f] = text[b,j,f] (f<F)
        base = jnp.concatenate([text, jnp.zeros_like(text)], axis=-1)
        base = base.reshape(B, 1, l2f)
        # hidden_2 pattern [0_F, x_i] tiled to one 128-aligned lane period W.
        rows = jnp.tile(
            jnp.concatenate([jnp.zeros_like(text), text], axis=-1),
            (1, 1, w // two_f),
        )                                                # (B, L, W)

        vmem_need = 2 * (ti * cw + ti * w + cw) * itemsize   # double-buffered
        vmem_limit = int(min(max(2 * vmem_need, 4 << 20), 48 << 20))

        out_flat = pl.pallas_call(
            _pair_rows_dense_kernel,
            out_shape=jax.ShapeDtypeStruct((B, L, l2f), text.dtype),
            grid_spec=pltpu.PrefetchScalarGridSpec(
                num_scalar_prefetch=0,
                grid=grid,
                in_specs=[
                    # row-invariant; tiny block, re-fetched only when c changes
                    pl.BlockSpec((1, 1, cw), lambda b, t, c: (b, 0, c)),
                    # column-invariant; fetched once per row tile
                    pl.BlockSpec((1, ti, w), lambda b, t, c: (b, t, 0)),
                ],
                out_specs=pl.BlockSpec((1, ti, cw), lambda b, t, c: (b, t, c)),
            ),
            compiler_params=pltpu.CompilerParams(
                dimension_semantics=("parallel", "parallel", "arbitrary"),
                vmem_limit_bytes=vmem_limit,
            ),
            cost_estimate=cost,
        )(base, rows)
        # Free, contiguous trailing-dim split.
        return out_flat.reshape(B, L, L, two_f)

    # ---- general fallback: keep (B, L, L, 2F) layout, two direct half-stores
    ti = _pick_row_tile(L, l2f * itemsize, block_budget_bytes)
    grid = (B, pl.cdiv(L, ti))
    vmem_need = 2 * (ti * l2f + ti * F + L * F) * itemsize
    vmem_limit = int(min(max(2 * vmem_need, 4 << 20), 48 << 20))
    return pl.pallas_call(
        _pair_gen_general_kernel,
        out_shape=jax.ShapeDtypeStruct((B, L, L, two_f), text.dtype),
        grid_spec=pltpu.PrefetchScalarGridSpec(
            num_scalar_prefetch=0,
            grid=grid,
            in_specs=[
                pl.BlockSpec((1, L, F), lambda b, t: (b, 0, 0)),
                pl.BlockSpec((1, ti, F), lambda b, t: (b, t, 0)),
            ],
            out_specs=pl.BlockSpec((1, ti, L, two_f), lambda b, t: (b, t, 0, 0)),
        ),
        compiler_params=pltpu.CompilerParams(
            dimension_semantics=("parallel", "parallel"),
            vmem_limit_bytes=vmem_limit,
        ),
        cost_estimate=cost,
    )(text, text)


# ---------------------------------------------------------------------------
# Module-like container (weight/bias exist but are unused, faithful to PyTorch)
# ---------------------------------------------------------------------------
class PairGeneration0Params:
    def __init__(self, features, bias=False, key=jax.random.PRNGKey(42)):
        self.features = features
        kw, kb = jax.random.split(key)
        # The PyTorch module declares these parameters but never uses them in
        # forward; kept here only for interface fidelity.
        self.weight = jax.random.normal(kw, (features, features), dtype=jnp.float32)
        self.bias = (
            jax.random.normal(kb, (features,), dtype=jnp.float32) if bias else None
        )

    def __call__(self, text, **kwargs):
        return pair_generation0(text, **kwargs)


def _reference(text):
    B, L, F = text.shape
    hidden_1 = jnp.broadcast_to(text[:, None, :, :], (B, L, L, F))
    hidden_2 = jnp.broadcast_to(text[:, :, None, :], (B, L, L, F))
    return jnp.concatenate([hidden_1, hidden_2], axis=-1)


if __name__ == "__main__":
    # Primary shape implied by the module: batch=2, seq=8, features=32.
    B, L, F = 2, 8, 32
    text = jax.random.normal(jax.random.PRNGKey(0), (B, L, F), dtype=jnp.float32)

    module = PairGeneration0Params(features=F, bias=False)
    out = jax.block_until_ready(module(text))
    ref = _reference(text)
    assert out.shape == (B, L, L, 2 * F), out.shape
    assert jnp.allclose(out, ref), "mismatch vs reference (primary)"

    # Exercise the tiled dense path (multiple row tiles and column tiles) with
    # a deliberately tiny block budget.
    B2, L2, F2 = 2, 16, 32
    text2 = jax.random.normal(jax.random.PRNGKey(1), (B2, L2, F2), dtype=jnp.float32)
    out2 = jax.block_until_ready(pair_generation0(text2, block_budget_bytes=1 << 12))
    assert out2.shape == (B2, L2, L2, 2 * F2), out2.shape
    assert jnp.allclose(out2, _reference(text2)), "mismatch vs reference (tiled)"

    print("KERNEL_OK")
</pallas_src>

<mosaic_0001>
module attributes {stable_mosaic.version = 11 : i64} {
  func.func @_pair_rows_dense_kernel(%arg0: i32, %arg1: i32, %arg2: i32, %arg3: memref<1x1x512xf32, #tpu.memory_space<vmem>>, %arg4: memref<1x8x128xf32, #tpu.memory_space<vmem>>, %arg5: memref<1x8x512xf32, #tpu.memory_space<vmem>>) attributes {dimension_semantics = [#tpu.dimension_semantics<parallel>, #tpu.dimension_semantics<parallel>, #tpu.dimension_semantics<arbitrary>], iteration_bounds = array<i64: 2, 1, 1>, scalar_prefetch = 0 : i64, scratch_operands = 0 : i64, tpu.core_type = #tpu.core_type<tc>, window_params = [{transform_indices = @transform_0, window_bounds = array<i64: 1, 1, 512>}, {transform_indices = @transform_1, window_bounds = array<i64: 1, 8, 128>}, {transform_indices = @transform_2, window_bounds = array<i64: 1, 8, 512>}]} {
    %c0 = arith.constant 0 : index
    %c0_0 = arith.constant 0 : index
    %c0_1 = arith.constant 0 : index
    %0 = vector.load %arg3[%c0, %c0_0, %c0_1] : memref<1x1x512xf32, #tpu.memory_space<vmem>>, vector<1x1x128xf32>
    %1 = vector.shape_cast %0 : vector<1x1x128xf32> to vector<1x128xf32>
    %c0_2 = arith.constant 0 : index
    %c0_3 = arith.constant 0 : index
    %c0_4 = arith.constant 0 : index
    %2 = vector.load %arg4[%c0_2, %c0_3, %c0_4] : memref<1x8x128xf32, #tpu.memory_space<vmem>>, vector<1x8x128xf32>
    %3 = vector.shape_cast %2 : vector<1x8x128xf32> to vector<8x128xf32>
    %4 = vector.broadcast %1 : vector<1x128xf32> to vector<8x128xf32>
    %5 = arith.addf %4, %3 : vector<8x128xf32>
    %c0_5 = arith.constant 0 : index
    %c0_6 = arith.constant 0 : index
    %c0_7 = arith.constant 0 : index
    %6 = vector.load %arg5[%c0_5, %c0_6, %c0_7] : memref<1x8x512xf32, #tpu.memory_space<vmem>>, vector<1x8x128xf32>
    %7 = vector.shape_cast %6 : vector<1x8x128xf32> to vector<8x128xf32>
    %8 = vector.shape_cast %5 : vector<8x128xf32> to vector<1x8x128xf32>
    tpu.vector_store %arg5[%c0_5, %c0_6, %c0_7], %8 {strides = array<i32>} : memref<1x8x512xf32, #tpu.memory_space<vmem>>, vector<1x8x128xf32>,
    %c0_8 = arith.constant 0 : index
    %c0_9 = arith.constant 0 : index
    %c128 = arith.constant 128 : index
    %9 = vector.load %arg3[%c0_8, %c0_9, %c128] : memref<1x1x512xf32, #tpu.memory_space<vmem>>, vector<1x1x128xf32>
    %10 = vector.shape_cast %9 : vector<1x1x128xf32> to vector<1x128xf32>
    %c0_10 = arith.constant 0 : index
    %c0_11 = arith.constant 0 : index
    %c0_12 = arith.constant 0 : index
    %11 = vector.load %arg4[%c0_10, %c0_11, %c0_12] : memref<1x8x128xf32, #tpu.memory_space<vmem>>, vector<1x8x128xf32>
    %12 = vector.shape_cast %11 : vector<1x8x128xf32> to vector<8x128xf32>
    %13 = vector.broadcast %10 : vector<1x128xf32> to vector<8x128xf32>
    %14 = arith.addf %13, %12 : vector<8x128xf32>
    %c0_13 = arith.constant 0 : index
    %c0_14 = arith.constant 0 : index
    %c128_15 = arith.constant 128 : index
    %15 = vector.load %arg5[%c0_13, %c0_14, %c128_15] : memref<1x8x512xf32, #tpu.memory_space<vmem>>, vector<1x8x128xf32>
    %16 = vector.shape_cast %15 : vector<1x8x128xf32> to vector<8x128xf32>
    %17 = vector.shape_cast %14 : vector<8x128xf32> to vector<1x8x128xf32>
    tpu.vector_store %arg5[%c0_13, %c0_14, %c128_15], %17 {strides = array<i32>} : memref<1x8x512xf32, #tpu.memory_space<vmem>>, vector<1x8x128xf32>,
    %c0_16 = arith.constant 0 : index
    %c0_17 = arith.constant 0 : index
    %c256 = arith.constant 256 : index
    %18 = vector.load %arg3[%c0_16, %c0_17, %c256] : memref<1x1x512xf32, #tpu.memory_space<vmem>>, vector<1x1x128xf32>
    %19 = vector.shape_cast %18 : vector<1x1x128xf32> to vector<1x128xf32>
    %c0_18 = arith.constant 0 : index
    %c0_19 = arith.constant 0 : index
    %c0_20 = arith.constant 0 : index
    %20 = vector.load %arg4[%c0_18, %c0_19, %c0_20] : memref<1x8x128xf32, #tpu.memory_space<vmem>>, vector<1x8x128xf32>
    %21 = vector.shape_cast %20 : vector<1x8x128xf32> to vector<8x128xf32>
    %22 = vector.broadcast %19 : vector<1x128xf32> to vector<8x128xf32>
    %23 = arith.addf %22, %21 : vector<8x128xf32>
    %c0_21 = arith.constant 0 : index
    %c0_22 = arith.constant 0 : index
    %c256_23 = arith.constant 256 : index
    %24 = vector.load %arg5[%c0_21, %c0_22, %c256_23] : memref<1x8x512xf32, #tpu.memory_space<vmem>>, vector<1x8x128xf32>
    %25 = vector.shape_cast %24 : vector<1x8x128xf32> to vector<8x128xf32>
    %26 = vector.shape_cast %23 : vector<8x128xf32> to vector<1x8x128xf32>
    tpu.vector_store %arg5[%c0_21, %c0_22, %c256_23], %26 {strides = array<i32>} : memref<1x8x512xf32, #tpu.memory_space<vmem>>, vector<1x8x128xf32>,
    %c0_24 = arith.constant 0 : index
    %c0_25 = arith.constant 0 : index
    %c384 = arith.constant 384 : index
    %27 = vector.load %arg3[%c0_24, %c0_25, %c384] : memref<1x1x512xf32, #tpu.memory_space<vmem>>, vector<1x1x128xf32>
    %28 = vector.shape_cast %27 : vector<1x1x128xf32> to vector<1x128xf32>
    %c0_26 = arith.constant 0 : index
    %c0_27 = arith.constant 0 : index
    %c0_28 = arith.constant 0 : index
    %29 = vector.load %arg4[%c0_26, %c0_27, %c0_28] : memref<1x8x128xf32, #tpu.memory_space<vmem>>, vector<1x8x128xf32>
    %30 = vector.shape_cast %29 : vector<1x8x128xf32> to vector<8x128xf32>
    %31 = vector.broadcast %28 : vector<1x128xf32> to vector<8x128xf32>
    %32 = arith.addf %31, %30 : vector<8x128xf32>
    %c0_29 = arith.constant 0 : index
    %c0_30 = arith.constant 0 : index
    %c384_31 = arith.constant 384 : index
    %33 = vector.load %arg5[%c0_29, %c0_30, %c384_31] : memref<1x8x512xf32, #tpu.memory_space<vmem>>, vector<1x8x128xf32>
    %34 = vector.shape_cast %33 : vector<1x8x128xf32> to vector<8x128xf32>
    %35 = vector.shape_cast %32 : vector<8x128xf32> to vector<1x8x128xf32>
    tpu.vector_store %arg5[%c0_29, %c0_30, %c384_31], %35 {strides = array<i32>} : memref<1x8x512xf32, #tpu.memory_space<vmem>>, vector<1x8x128xf32>,
    return
  }
  func.func @transform_0(%arg0: i32, %arg1: i32, %arg2: i32) -> (i32, i32, i32) {
    %c0_i32 = arith.constant 0 : i32
    %c0_i32_0 = arith.constant 0 : i32
    return %arg0, %c0_i32, %arg2 : i32, i32, i32
  }
  func.func @transform_1(%arg0: i32, %arg1: i32, %arg2: i32) -> (i32, i32, i32) {
    %c0_i32 = arith.constant 0 : i32
    %c0_i32_0 = arith.constant 0 : i32
    return %arg0, %arg1, %c0_i32 : i32, i32, i32
  }
  func.func @transform_2(%arg0: i32, %arg1: i32, %arg2: i32) -> (i32, i32, i32) {
    %c0_i32 = arith.constant 0 : i32
    return %arg0, %arg1, %arg2 : i32, i32, i32
  }
}

</mosaic_0001>

<bundles_post_ra>
// kernel: tpu_custom_call.1
= control target key start
LH: loop header
LB: loop body
LE: loop exit
PB: predicated region body
PF: predicated region fallthrough
CT: control target
= control target key end

     0   :  { %7 = vsyncpa [#allocation3], 0  ;;  %s784_s0 = inlined_call_operand.hbm [shape: f32[2,1,512], index: 0, kind: input, shape index: {}]   ;;  %s785_s1 = inlined_call_operand.hbm [shape: f32[2,8,128], index: 1, kind: input, shape index: {}]   ;;  %s786_s2 = inlined_call_operand.hbm [shape: f32[2,8,512], index: 2, kind: output, shape index: {}]  }
   0x1   :  { %9 = vsyncpa [#allocation3 + $0x1], 0 }
   0x2   :  { %10 = vsyncpa [#allocation6], 0 }
   0x3   :  { %12 = vsyncpa [#allocation6 + $0x1], 0 }
   0x4   :  { %13 = vsyncpa [#allocation4], 0 }
   0x5   :  { %15 = vsyncpa [#allocation4 + $0x1], 0  ;;  %s645_s9 = smov 0   ;;  %s647_s10 = smov 0  }
   0x6   :  { %s649_s11 = smov 0   ;;  %s651_s12 = smov 0  }
   0x7   :  { %s653_s13 = smov 0   ;;  %s655_s14 = smov 0  }
   0x8 LB: > { %s393_s15 = sadd.s32 4294967295, %s628_s14   ;;  %s394_s16 = sadd.s32 4294967294, %s628_s14   ;;  %s628_s14 = sphi %s655_s14, %s21_s14   ;;  %s624_s13 = sphi %s653_s13, %s796_s13   ;;  %s620_s12 = sphi %s651_s12, %s795_s12   ;;  %s616_s11 = sphi %s649_s11, %s794_s11   ;;  %s612_s10 = sphi %s647_s10, %s793_s10   ;;  %s608_s9 = sphi %s645_s9, %s792_s9  }
   0x9   : > { %s40_s17 = sadd.s32 1, %s624_s13  ;;  %s49_s18 = sadd.s32 1, %s616_s11 }
   0xa   : > { %p42_p0 = scmp.ge.s32.totalorder %s40_s17, 2  ;;  %p56_p1 = scmp.ne.s32.totalorder %s616_s11, %s612_s10 }
   0xb   : > { %p57_p2 = scmp.eq.s32.totalorder %s628_s14, 0  ;;  %p62_p3 = scmp.ne.s32.totalorder %s612_s10, %s608_s9 }
   0xc   : > { %s798_s17 = smov (%p42_p0, %s40_s17), 0  ;;  %p63_p5 = scmp.eq.s32.totalorder %s393_s15, 0 }
   0xd   : > { %p686_p4 = por %p57_p2, %p56_p1  ;;  %s44_s20 = ssub.s32 %s624_s13, %s798_s17 }
   0xe   : > { %p118_p6 = scmp.eq.s32.totalorder %s393_s15, 1  ;;  %p47_p7 = scmp.eq.s32.totalorder %s44_s20, 0 }
   0xf   : > { %p692_p8 = por %p63_p5, %p62_p3  ;;  %p124_p10 = scmp.eq.s32.totalorder %s394_s16, 1 }
  0x10   : > { %p696_p9 = por %p118_p6, %p56_p1  ;;  %p396_p12 = scmp.ge.s32.totalorder %s628_s14, 2 }
  0x11   : > { %s701_s23 = scalar_select %p47_p7, %s616_s11, %s49_s18  }
  0x12   : > { %p703_p11 = por %p124_p10, %p62_p3  ;;  %p428_p13 = scmp.lt.s32.totalorder %s628_s14, 2 }
  0x13   : > { %s144_s25 = sand.u32 1, %s616_s11   ;;  %s398_s27 = sshll.u32 %s624_s13, 2 }
  0x14   : > { %s397_s26 = sshll.u32 %s144_s25, 2  ;;  %s154_s30 = scalar_lea.hbm %s784_s0, %s398_s27 }
  0x15   : > { %s148_s3 = scalar_lea.vmem [#allocation2], %s397_s26  ;;  %s156_s5 = sshll.u32 %s154_s30, 4  ;;  %s157_s5 = int_to_ptr.hbm [resolvable:$true] %s156_s5 }
  0x16   : > { %s158_s4 = sshll.u32 %s148_s3, 4  ;;  %p716_p0 = pnand %p428_p13, %p686_p4  ;;  %s159_s4 = int_to_ptr.vmem [resolvable:$true] %s158_s4 }
  0x17   : > { %p401_p1 = scmp.ge.s32.totalorder %s628_s14, 1  ;;  %p183_p2 = scmp.lt.s32.totalorder %s628_s14, 3 }
  0x18   : > { %s145_s7 = scalar_lea.sflag [#allocation3], %s144_s25  ;;  %s399_s8 = sshll.u32 %s144_s25, 3 }
  0x19   : > { %420 = dma.hbm_to_vmem [thread:$0]  (!%p716_p0), %s157_s5, 64, %s159_s4, %s145_s7  }
  0x1a   : > { %p184_p3 = pnand %p401_p1, %p183_p2  ;;  %s400_s15 = sshll.u32 %s624_s13, 3 }
  0x1b   : > { %s174_s20 = scalar_lea.hbm %s785_s1, %s400_s15  ;;  %s169_s26 = scalar_lea.vmem [#allocation5], %s399_s8 }
  0x1c   : > { %s178_s19 = sshll.u32 %s169_s26, 4  ;;  %s176_s27 = sshll.u32 %s174_s20, 4  ;;  %s179_s19 = int_to_ptr.vmem [resolvable:$true] %s178_s19  ;;  %s177_s27 = int_to_ptr.hbm [resolvable:$true] %s176_s27 }
  0x1d   : > { %s166_s28 = scalar_lea.sflag [#allocation6], %s144_s25  ;;  %187 = sbr.rel (%p184_p3) target bundleno = 53 (0x35), region = 28 }
  0x1e   : > { %423 = dma.hbm_to_vmem [thread:$0]  (!%p716_p0), %s177_s27, 128, %s179_s19, %s166_s28  }
  0x1f   : > { %s731_s29 = sand.u32 (!%p184_p3), 1, %s612_s10  }
  0x20   : > { %s402_s30 = sshll.u32 (!%p184_p3), %s731_s29, 2  ;;  %s190_s3 = scalar_lea.sflag (!%p184_p3), [#allocation3], %s731_s29 }
  0x21   : > { %s193_s4 = scalar_lea.vmem (!%p184_p3), [#allocation2], %s402_s30 }
  0x22   : > { %595 = dma.done.wait (%p692_p8), %s190_s3, 64  }
  0x23   : > { %597 = vsyncadd (%p692_p8), %s190_s3, 4294967232  ;;  %s403_s25 = sshll.u32 %s731_s29, 3  ;;  %s200_s5 = scalar_lea.sflag [#allocation6], %s731_s29 }
  0x24   : > { %s203_s6 = scalar_lea.vmem [#allocation5], %s403_s25 }
  0x25   : > { %599 = dma.done.wait (%p692_p8), %s200_s5, 128  }
  0x26   : > { %601 = vsyncadd (%p692_p8), %s200_s5, 4294967168  ;;  %s404_s7 = sshll.u32 %s731_s29, 5  ;;  %s410_s8 = sshll.u32 %s620_s12, 5  ;;  %v233_v0 = vld [vmem:[%s203_s6] sm:$0xff]  ;;  %v478_v1 = vld [vmem:[%s193_s4] ss:$0 sm:$0xff] }
  0x27   : > { %s276_s18 = scalar_lea.hbm %s786_s2, %s410_s8  ;;  %s229_s20 = scalar_lea.vmem [#allocation7], %s404_s7  ;;  %v479_v2 = vld [vmem:[%s193_s4 + $0x1] ss:$0 sm:$0xff]  ;;  %v237_v3 = vadd.f32 %v478_v1, %v233_v0  ;;  %v480_v4 = vld [vmem:[%s193_s4 + $0x2] ss:$0 sm:$0xff] }
  0x28   : > { %s278_s26 = sshll.u32 %s229_s20, 4  ;;  %s280_s19 = sshll.u32 %s276_s18, 4  ;;  %v481_v5 = vld [vmem:[%s193_s4 + $0x3] ss:$0 sm:$0xff]  ;;  %v244_v6 = vadd.f32 %v479_v2, %v233_v0  ;;  %v251_v7 = vadd.f32 %v480_v4, %v233_v0  ;;  %s279_s26 = int_to_ptr.vmem [resolvable:$true] %s278_s26  ;;  %s281_s19 = int_to_ptr.hbm [resolvable:$true] %s280_s19 }
  0x29   : > { %238 = vst [vmem:[%s229_s20] sm:$0xff] %v237_v3  ;;  %v258_v8 = vadd.f32 %v481_v5, %v233_v0  ;;  %s261_s12 = scalar_lea.sflag [#allocation4], %s731_s29  ;;  %s556_s21 = sshra.s32 %s281_s19, 4  ;;  %s557_s21 = int_to_ptr.hbm [resolvable:$true] %s556_s21 }
  0x2a   : > { %245 = vst [vmem:[%s229_s20 + $0x8] sm:$0xff] %v244_v6  ;;  %s558_s27 = scalar_lea.hbm %s557_s21, 32  ;;  %s562_s3 = scalar_lea.hbm %s786_s2, 64 }
  0x2b   : > { %252 = vst [vmem:[%s229_s20 + $0x10] sm:$0xff] %v251_v7  ;;  %p559_p4 = scmp.ne.s32.totalorder %s557_s21, %s558_s27  ;;  %p563_p7 = scmp.lt.s32.totalorder %s557_s21, %s786_s2 }
  0x2c   : > { %259 = vst [vmem:[%s229_s20 + $0x18] sm:$0xff] %v258_v8  ;;  %p564_p8 = scmp.lt.s32.totalorder %s562_s3, %s558_s27 }
  0x2d   : > { %p560_p5 = pnand %p559_p4, %p696_p9 }
  0x2e   : > { %p565_p10 = por %p564_p8, %p563_p7 }
  0x2f   : > { %p561_p6 = pneg %p560_p5 }
  0x31   : > { %p566_p13 = pnand %p565_p10, %p561_p6 }
  0x33   : > { %569 = shalt.err (!%p566_p13)
}
  0x34   : > { %415 = dma.vmem_to_hbm [thread:$0]  (%p696_p9), %s279_s26, 512, %s281_s19, %s261_s12  }
  0x35 PF: > { %s292_s29 = sand.u32 1, %s608_s9   ;;  %p425_p0 = pnand %p396_p12, %p703_p11 }
  0x36   : > { %s293_s5 = scalar_lea.sflag [#allocation4], %s292_s29 }
  0x37   : > { %p426_p1 = pneg %p425_p0 }
  0x39   : > { %603 = dma.done.wait (%p426_p1), %s293_s5, 512  }
  0x3a   : > { %605 = vsyncadd (%p426_p1), %s293_s5, 4294966784  ;;  %s21_s14 = sadd.s32 1, %s628_s14   ;;  %s792_s9 = smov %s612_s10 }
  0x3b   : > { %p18_p2 = scmp.ge.s32.totalorder %s21_s14, 4   ;;  %s793_s10 = smov %s616_s11 }
  0x3c   : > { %s794_s11 = smov %s701_s23  ;;  %s795_s12 = smov %s624_s13 }
  0x3d   : > { %s796_s13 = smov %s798_s17  ;;  %20 = sbr.rel (!%p18_p2) target bundleno = 8 (0x8), region = 86 }
  0x42   :  { %299 = vsyncpa [#allocation3], 1 }
  0x43   :  { %301 = vsyncpa [#allocation3 + $0x1], 1 }
  0x44   :  { %302 = vsyncpa [#allocation6], 1 }
  0x45   :  { %304 = vsyncpa [#allocation6 + $0x1], 1 }
  0x46   :  { %305 = vsyncpa [#allocation4], 1 }
  0x47   :  { %307 = vsyncpa [#allocation4 + $0x1], 1 }

</bundles_post_ra>
